<compile_context>
chip_gen: v6e
topology: v6e:2x2x1
jax: 0.10.0
libtpu: 0.0.40
codegen_flags: <defaults>
</compile_context>

<pallas_src>
import functools

import jax
import jax.numpy as jnp
from jax.experimental import pallas as pl
from jax.experimental.pallas import tpu as pltpu


def _adapter_kernel(x_ref, h_ref, w1_ref, b1_ref, w2_ref, b2_ref,
                    wu_ref, bu1_ref, bu2_ref, o_ref, *, bottleneck):
    bn = bottleneck
    x = x_ref[...]
    h = h_ref[...]

    # Fused (down | scale) projection per branch: one MXU matmul each.
    f_t = jnp.dot(x, w1_ref[...], preferred_element_type=jnp.float32) + b1_ref[...]
    f_h = jnp.dot(h, w2_ref[...], preferred_element_type=jnp.float32) + b2_ref[...]

    s_t = jnp.maximum(f_t[:, bn:bn + 1], 0.0)          # relu(scale_t(x))      (T, 1)
    s_h = jnp.maximum(f_h[:, bn:bn + 1], 0.0)          # relu(scale_h(h))      (T, 1)

    # TODO(synk): PyTorch nn.GELU() default is the exact erf form; the tanh
    # approximation is used here (tanh lowers to the EUP slot on all TPU
    # generations; max abs deviation ~1e-3).
    g_t = jax.nn.gelu(f_t[:, :bn], approximate=True) * s_t   # (T, bn)
    g_h = jax.nn.gelu(f_h[:, :bn], approximate=True) * s_h   # (T, bn)

    # The per-row scale commutes through the up-projection, so both branches
    # fuse into a single K = 2*bn matmul; scaled up-proj biases added after.
    fused = jnp.concatenate([g_t, g_h], axis=-1)             # (T, 2*bn)
    out = jnp.dot(fused, wu_ref[...], preferred_element_type=jnp.float32)
    out = out + s_t * bu1_ref[...] + s_h * bu2_ref[...]

    o_ref[...] = out.astype(o_ref.dtype)


def hybrid_dynamic_adapter(x, h_token, params, *, tok_tile=512):
    """x, h_token: (..., d_model) with identical shapes. Returns same shape."""
    assert x.shape == h_token.shape, "x and h_token must share a shape"
    *lead, D = x.shape
    bn = params["d1_w"].shape[0]
    F = bn + 1

    total = 1
    for s in lead:
        total *= s

    x2 = x.reshape(total, D)
    h2 = h_token.reshape(total, D)

    # Token-tile size: multiple of 8 sublanes, no bigger than needed.
    tok_tile = max(8, min(tok_tile, ((total + 7) // 8) * 8))
    tok_tile = ((tok_tile + 7) // 8) * 8
    padded = pl.cdiv(total, tok_tile) * tok_tile
    if padded != total:
        pad = padded - total
        x2 = jnp.pad(x2, ((0, pad), (0, 0)))
        h2 = jnp.pad(h2, ((0, pad), (0, 0)))

    # Fused weights, pre-transposed to (in, out).
    w1 = jnp.concatenate([params["d1_w"].T, params["scale_t_w"].T], axis=1)  # (D, bn+1)
    b1 = jnp.concatenate([params["d1_b"], params["scale_t_b"]]).reshape(1, F)
    w2 = jnp.concatenate([params["d2_w"].T, params["scale_h_w"].T], axis=1)  # (D, bn+1)
    b2 = jnp.concatenate([params["d2_b"], params["scale_h_b"]]).reshape(1, F)
    wu = jnp.concatenate([params["u1_w"].T, params["u2_w"].T], axis=0)       # (2*bn, D)
    bu1 = params["u1_b"].reshape(1, D)
    bu2 = params["u2_b"].reshape(1, D)

    grid = (padded // tok_tile,)

    itemsize = jnp.dtype(x.dtype).itemsize
    flops = 2 * padded * (2 * D * F + 2 * bn * D)
    transcendentals = padded * 2 * bn  # one tanh per gelu element
    bytes_accessed = (3 * padded * D * itemsize
                      + (2 * D * F + 2 * bn * D + 2 * F + 2 * D) * 4)

    kernel = functools.partial(_adapter_kernel, bottleneck=bn)

    out = pl.pallas_call(
        kernel,
        out_shape=jax.ShapeDtypeStruct((padded, D), x.dtype),
        grid=grid,
        in_specs=[
            pl.BlockSpec((tok_tile, D), lambda i: (i, 0)),   # x tile
            pl.BlockSpec((tok_tile, D), lambda i: (i, 0)),   # h_token tile
            pl.BlockSpec((D, F), lambda i: (0, 0)),          # fused down|scale (t)
            pl.BlockSpec((1, F), lambda i: (0, 0)),
            pl.BlockSpec((D, F), lambda i: (0, 0)),          # fused down|scale (h)
            pl.BlockSpec((1, F), lambda i: (0, 0)),
            pl.BlockSpec((2 * bn, D), lambda i: (0, 0)),     # fused up-projection
            pl.BlockSpec((1, D), lambda i: (0, 0)),          # u1 bias
            pl.BlockSpec((1, D), lambda i: (0, 0)),          # u2 bias
        ],
        out_specs=pl.BlockSpec((tok_tile, D), lambda i: (i, 0)),
        compiler_params=pltpu.CompilerParams(
            dimension_semantics=("parallel",)),
        cost_estimate=pl.CostEstimate(
            flops=flops, transcendentals=transcendentals,
            bytes_accessed=bytes_accessed),
    )(x2, h2, w1, b1, w2, b2, wu, bu1, bu2)

    if padded != total:
        out = out[:total]
    return out.reshape(*lead, D)


def reference(x, h_token, params):
    """Pure-JAX mirror of the PyTorch forward pass (tanh-approx GELU)."""
    s_t = jax.nn.relu(x @ params["scale_t_w"].T + params["scale_t_b"])
    d_t = jax.nn.gelu(x @ params["d1_w"].T + params["d1_b"], approximate=True)
    T_m = (d_t @ params["u1_w"].T + params["u1_b"]) * s_t
    s_h = jax.nn.relu(h_token @ params["scale_h_w"].T + params["scale_h_b"])
    d_h = jax.nn.gelu(h_token @ params["d2_w"].T + params["d2_b"], approximate=True)
    T_n = (d_h @ params["u2_w"].T + params["u2_b"]) * s_h
    return T_m + T_n


if __name__ == "__main__":
    # Small shapes consistent with the module: tokens x d_model per input.
    B, N, D, BN = 2, 64, 128, 32

    key = jax.random.PRNGKey(0)
    ks = jax.random.split(key, 14)
    x = jax.random.normal(ks[0], (B, N, D), jnp.float32)
    h_token = jax.random.normal(ks[1], (B, N, D), jnp.float32)

    params = {
        "scale_t_w": jax.random.normal(ks[2], (1, D), jnp.float32) * 0.1,
        "scale_t_b": jax.random.normal(ks[3], (1,), jnp.float32) * 0.1,
        "d1_w": jax.random.normal(ks[4], (BN, D), jnp.float32) * 0.1,
        "d1_b": jax.random.normal(ks[5], (BN,), jnp.float32) * 0.1,
        # up_proj weights/biases are zero-initialized in the PyTorch module;
        # nonzero values are used here so the adapter path is exercised.
        "u1_w": jax.random.normal(ks[6], (D, BN), jnp.float32) * 0.1,
        "u1_b": jax.random.normal(ks[7], (D,), jnp.float32) * 0.1,
        "scale_h_w": jax.random.normal(ks[8], (1, D), jnp.float32) * 0.1,
        "scale_h_b": jax.random.normal(ks[9], (1,), jnp.float32) * 0.1,
        "d2_w": jax.random.normal(ks[10], (BN, D), jnp.float32) * 0.1,
        "d2_b": jax.random.normal(ks[11], (BN,), jnp.float32) * 0.1,
        "u2_w": jax.random.normal(ks[12], (D, BN), jnp.float32) * 0.1,
        "u2_b": jax.random.normal(ks[13], (D,), jnp.float32) * 0.1,
    }

    out = hybrid_dynamic_adapter(x, h_token, params, tok_tile=64)
    out = jax.block_until_ready(out)

    ref = reference(x, h_token, params)
    assert out.shape == (B, N, D)
    assert bool(jnp.allclose(out, ref, atol=1e-4, rtol=1e-4))
    print("KERNEL_OK")
</pallas_src>

<mosaic_0001>
module attributes {stable_mosaic.version = 11 : i64} {
  func.func @_adapter_kernel(%arg0: i32, %arg1: memref<64x128xf32, #tpu.memory_space<vmem>>, %arg2: memref<64x128xf32, #tpu.memory_space<vmem>>, %arg3: memref<128x33xf32, #tpu.memory_space<vmem>>, %arg4: memref<1x33xf32, #tpu.memory_space<vmem>>, %arg5: memref<128x33xf32, #tpu.memory_space<vmem>>, %arg6: memref<1x33xf32, #tpu.memory_space<vmem>>, %arg7: memref<64x128xf32, #tpu.memory_space<vmem>>, %arg8: memref<1x128xf32, #tpu.memory_space<vmem>>, %arg9: memref<1x128xf32, #tpu.memory_space<vmem>>, %arg10: memref<64x128xf32, #tpu.memory_space<vmem>>) attributes {dimension_semantics = [#tpu.dimension_semantics<parallel>], iteration_bounds = array<i64: 2>, scalar_prefetch = 0 : i64, scratch_operands = 0 : i64, tpu.core_type = #tpu.core_type<tc>, window_params = [{transform_indices = @transform_0, window_bounds = array<i64: 64, 128>}, {transform_indices = @transform_1, window_bounds = array<i64: 64, 128>}, {pipeline_mode = #tpu.pipeline_mode<synchronous>, transform_indices = @transform_2, window_bounds = array<i64: 128, 33>}, {pipeline_mode = #tpu.pipeline_mode<synchronous>, transform_indices = @transform_3, window_bounds = array<i64: 1, 33>}, {pipeline_mode = #tpu.pipeline_mode<synchronous>, transform_indices = @transform_4, window_bounds = array<i64: 128, 33>}, {pipeline_mode = #tpu.pipeline_mode<synchronous>, transform_indices = @transform_5, window_bounds = array<i64: 1, 33>}, {pipeline_mode = #tpu.pipeline_mode<synchronous>, transform_indices = @transform_6, window_bounds = array<i64: 64, 128>}, {pipeline_mode = #tpu.pipeline_mode<synchronous>, transform_indices = @transform_7, window_bounds = array<i64: 1, 128>}, {pipeline_mode = #tpu.pipeline_mode<synchronous>, transform_indices = @transform_8, window_bounds = array<i64: 1, 128>}, {transform_indices = @transform_9, window_bounds = array<i64: 64, 128>}]} {
    %c0 = arith.constant 0 : index
    %c0_0 = arith.constant 0 : index
    %0 = vector.load %arg1[%c0, %c0_0] : memref<64x128xf32, #tpu.memory_space<vmem>>, vector<64x128xf32>
    %c0_1 = arith.constant 0 : index
    %c0_2 = arith.constant 0 : index
    %1 = vector.load %arg2[%c0_1, %c0_2] : memref<64x128xf32, #tpu.memory_space<vmem>>, vector<64x128xf32>
    %c0_3 = arith.constant 0 : index
    %c0_4 = arith.constant 0 : index
    %2 = vector.load %arg3[%c0_3, %c0_4] : memref<128x33xf32, #tpu.memory_space<vmem>>, vector<128x33xf32>
    %cst = arith.constant dense<0.000000e+00> : vector<64x33xf32>
    %3 = tpu.matmul %0, %2, %cst {dimension_numbers = #tpu.dot_dimension_numbers<[1], [0], [0], [1], [0, 0, 1, 1], [], []>} : vector<64x128xf32>, vector<128x33xf32>, vector<64x33xf32> -> vector<64x33xf32>
    %c0_5 = arith.constant 0 : index
    %c0_6 = arith.constant 0 : index
    %4 = vector.load %arg4[%c0_5, %c0_6] : memref<1x33xf32, #tpu.memory_space<vmem>>, vector<1x33xf32>
    %5 = vector.broadcast %4 : vector<1x33xf32> to vector<64x33xf32>
    %6 = arith.addf %3, %5 : vector<64x33xf32>
    %c0_7 = arith.constant 0 : index
    %c0_8 = arith.constant 0 : index
    %7 = vector.load %arg5[%c0_7, %c0_8] : memref<128x33xf32, #tpu.memory_space<vmem>>, vector<128x33xf32>
    %cst_9 = arith.constant dense<0.000000e+00> : vector<64x33xf32>
    %8 = tpu.matmul %1, %7, %cst_9 {dimension_numbers = #tpu.dot_dimension_numbers<[1], [0], [0], [1], [0, 0, 1, 1], [], []>} : vector<64x128xf32>, vector<128x33xf32>, vector<64x33xf32> -> vector<64x33xf32>
    %c0_10 = arith.constant 0 : index
    %c0_11 = arith.constant 0 : index
    %9 = vector.load %arg6[%c0_10, %c0_11] : memref<1x33xf32, #tpu.memory_space<vmem>>, vector<1x33xf32>
    %10 = vector.broadcast %9 : vector<1x33xf32> to vector<64x33xf32>
    %11 = arith.addf %8, %10 : vector<64x33xf32>
    %12 = vector.extract_strided_slice %6 {offsets = [0, 32], sizes = [64, 1], strides = [1, 1]} : vector<64x33xf32> to vector<64x1xf32>
    %cst_12 = arith.constant 0.000000e+00 : f32
    %13 = vector.broadcast %cst_12 : f32 to vector<64x1xf32>
    %14 = arith.maximumf %12, %13 : vector<64x1xf32>
    %15 = vector.extract_strided_slice %11 {offsets = [0, 32], sizes = [64, 1], strides = [1, 1]} : vector<64x33xf32> to vector<64x1xf32>
    %cst_13 = arith.constant 0.000000e+00 : f32
    %16 = vector.broadcast %cst_13 : f32 to vector<64x1xf32>
    %17 = arith.maximumf %15, %16 : vector<64x1xf32>
    %18 = vector.extract_strided_slice %6 {offsets = [0, 0], sizes = [64, 32], strides = [1, 1]} : vector<64x33xf32> to vector<64x32xf32>
    %19 = arith.mulf %18, %18 : vector<64x32xf32>
    %20 = arith.mulf %18, %19 : vector<64x32xf32>
    %cst_14 = arith.constant 4.471500e-02 : f32
    %21 = vector.broadcast %cst_14 : f32 to vector<64x32xf32>
    %22 = arith.mulf %21, %20 : vector<64x32xf32>
    %23 = arith.addf %18, %22 : vector<64x32xf32>
    %cst_15 = arith.constant 0.797884583 : f32
    %24 = vector.broadcast %cst_15 : f32 to vector<64x32xf32>
    %25 = arith.mulf %24, %23 : vector<64x32xf32>
    %26 = math.tanh %25 : vector<64x32xf32>
    %cst_16 = arith.constant 1.000000e+00 : f32
    %27 = vector.broadcast %cst_16 : f32 to vector<64x32xf32>
    %28 = arith.addf %27, %26 : vector<64x32xf32>
    %cst_17 = arith.constant 5.000000e-01 : f32
    %29 = vector.broadcast %cst_17 : f32 to vector<64x32xf32>
    %30 = arith.mulf %29, %28 : vector<64x32xf32>
    %31 = arith.mulf %18, %30 : vector<64x32xf32>
    %32 = vector.broadcast %14 : vector<64x1xf32> to vector<64x32xf32>
    %33 = arith.mulf %31, %32 : vector<64x32xf32>
    %34 = vector.extract_strided_slice %11 {offsets = [0, 0], sizes = [64, 32], strides = [1, 1]} : vector<64x33xf32> to vector<64x32xf32>
    %35 = arith.mulf %34, %34 : vector<64x32xf32>
    %36 = arith.mulf %34, %35 : vector<64x32xf32>
    %cst_18 = arith.constant 4.471500e-02 : f32
    %37 = vector.broadcast %cst_18 : f32 to vector<64x32xf32>
    %38 = arith.mulf %37, %36 : vector<64x32xf32>
    %39 = arith.addf %34, %38 : vector<64x32xf32>
    %cst_19 = arith.constant 0.797884583 : f32
    %40 = vector.broadcast %cst_19 : f32 to vector<64x32xf32>
    %41 = arith.mulf %40, %39 : vector<64x32xf32>
    %42 = math.tanh %41 : vector<64x32xf32>
    %cst_20 = arith.constant 1.000000e+00 : f32
    %43 = vector.broadcast %cst_20 : f32 to vector<64x32xf32>
    %44 = arith.addf %43, %42 : vector<64x32xf32>
    %cst_21 = arith.constant 5.000000e-01 : f32
    %45 = vector.broadcast %cst_21 : f32 to vector<64x32xf32>
    %46 = arith.mulf %45, %44 : vector<64x32xf32>
    %47 = arith.mulf %34, %46 : vector<64x32xf32>
    %48 = vector.broadcast %17 : vector<64x1xf32> to vector<64x32xf32>
    %49 = arith.mulf %47, %48 : vector<64x32xf32>
    %50 = tpu.concatenate %33, %49 in 1 : vector<64x32xf32>, vector<64x32xf32> -> vector<64x64xf32>
    %c0_22 = arith.constant 0 : index
    %c0_23 = arith.constant 0 : index
    %51 = vector.load %arg7[%c0_22, %c0_23] : memref<64x128xf32, #tpu.memory_space<vmem>>, vector<64x128xf32>
    %cst_24 = arith.constant dense<0.000000e+00> : vector<64x128xf32>
    %52 = tpu.matmul %50, %51, %cst_24 {dimension_numbers = #tpu.dot_dimension_numbers<[1], [0], [0], [1], [0, 0, 1, 1], [], []>} : vector<64x64xf32>, vector<64x128xf32>, vector<64x128xf32> -> vector<64x128xf32>
    %c0_25 = arith.constant 0 : index
    %c0_26 = arith.constant 0 : index
    %53 = vector.load %arg8[%c0_25, %c0_26] : memref<1x128xf32, #tpu.memory_space<vmem>>, vector<1x128xf32>
    %54 = vector.broadcast %14 : vector<64x1xf32> to vector<64x128xf32>
    %55 = vector.broadcast %53 : vector<1x128xf32> to vector<64x128xf32>
    %56 = arith.mulf %54, %55 : vector<64x128xf32>
    %57 = arith.addf %52, %56 : vector<64x128xf32>
    %c0_27 = arith.constant 0 : index
    %c0_28 = arith.constant 0 : index
    %58 = vector.load %arg9[%c0_27, %c0_28] : memref<1x128xf32, #tpu.memory_space<vmem>>, vector<1x128xf32>
    %59 = vector.broadcast %17 : vector<64x1xf32> to vector<64x128xf32>
    %60 = vector.broadcast %58 : vector<1x128xf32> to vector<64x128xf32>
    %61 = arith.mulf %59, %60 : vector<64x128xf32>
    %62 = arith.addf %57, %61 : vector<64x128xf32>
    %c0_29 = arith.constant 0 : index
    %c0_30 = arith.constant 0 : index
    %63 = vector.load %arg10[%c0_29, %c0_30] : memref<64x128xf32, #tpu.memory_space<vmem>>, vector<64x128xf32>
    tpu.vector_store %arg10[%c0_29, %c0_30], %62 {strides = array<i32>} : memref<64x128xf32, #tpu.memory_space<vmem>>, vector<64x128xf32>,
    return
  }
  func.func @transform_0(%arg0: i32) -> (i32, i32) {
    %c0_i32 = arith.constant 0 : i32
    %c0_i32_0 = arith.constant 0 : i32
    return %arg0, %c0_i32 : i32, i32
  }
  func.func @transform_1(%arg0: i32) -> (i32, i32) {
    %c0_i32 = arith.constant 0 : i32
    %c0_i32_0 = arith.constant 0 : i32
    return %arg0, %c0_i32 : i32, i32
  }
  func.func @transform_2(%arg0: i32) -> (i32, i32) {
    %c0_i32 = arith.constant 0 : i32
    %c0_i32_0 = arith.constant 0 : i32
    %c0_i32_1 = arith.constant 0 : i32
    return %c0_i32, %c0_i32_0 : i32, i32
  }
  func.func @transform_3(%arg0: i32) -> (i32, i32) {
    %c0_i32 = arith.constant 0 : i32
    %c0_i32_0 = arith.constant 0 : i32
    %c0_i32_1 = arith.constant 0 : i32
    return %c0_i32, %c0_i32_0 : i32, i32
  }
  func.func @transform_4(%arg0: i32) -> (i32, i32) {
    %c0_i32 = arith.constant 0 : i32
    %c0_i32_0 = arith.constant 0 : i32
    %c0_i32_1 = arith.constant 0 : i32
    return %c0_i32, %c0_i32_0 : i32, i32
  }
  func.func @transform_5(%arg0: i32) -> (i32, i32) {
    %c0_i32 = arith.constant 0 : i32
    %c0_i32_0 = arith.constant 0 : i32
    %c0_i32_1 = arith.constant 0 : i32
    return %c0_i32, %c0_i32_0 : i32, i32
  }
  func.func @transform_6(%arg0: i32) -> (i32, i32) {
    %c0_i32 = arith.constant 0 : i32
    %c0_i32_0 = arith.constant 0 : i32
    %c0_i32_1 = arith.constant 0 : i32
    return %c0_i32, %c0_i32_0 : i32, i32
  }
  func.func @transform_7(%arg0: i32) -> (i32, i32) {
    %c0_i32 = arith.constant 0 : i32
    %c0_i32_0 = arith.constant 0 : i32
    %c0_i32_1 = arith.constant 0 : i32
    return %c0_i32, %c0_i32_0 : i32, i32
  }
  func.func @transform_8(%arg0: i32) -> (i32, i32) {
    %c0_i32 = arith.constant 0 : i32
    %c0_i32_0 = arith.constant 0 : i32
    %c0_i32_1 = arith.constant 0 : i32
    return %c0_i32, %c0_i32_0 : i32, i32
  }
  func.func @transform_9(%arg0: i32) -> (i32, i32) {
    %c0_i32 = arith.constant 0 : i32
    %c0_i32_0 = arith.constant 0 : i32
    return %arg0, %c0_i32 : i32, i32
  }
}

</mosaic_0001>

<bundles_post_ra>
// kernel: tpu_custom_call.1
= control target key start
LH: loop header
LB: loop body
LE: loop exit
PB: predicated region body
PF: predicated region fallthrough
CT: control target
= control target key end

     0   :  { %14 = vsyncpa [#allocation3], 0  ;;  %s2108_s0 = inlined_call_operand.vmem [shape: f32[128,128], index: 0, kind: input, shape index: {}]   ;;  %s2109_s1 = inlined_call_operand.vmem [shape: f32[128,128], index: 1, kind: input, shape index: {}]   ;;  %s2110_s2 = inlined_call_operand.vmem [shape: f32[128,33], index: 2, kind: input, shape index: {}]   ;;  %s2111_s3 = inlined_call_operand.vmem [shape: f32[1,33], index: 3, kind: input, shape index: {}]   ;;  %s2112_s4 = inlined_call_operand.vmem [shape: f32[128,33], index: 4, kind: input, shape index: {}]   ;;  %s2113_s5 = inlined_call_operand.vmem [shape: f32[1,33], index: 5, kind: input, shape index: {}]   ;;  %s2114_s6 = inlined_call_operand.vmem [shape: f32[64,128], index: 6, kind: input, shape index: {}]   ;;  %s2115_s7 = inlined_call_operand.vmem [shape: f32[1,128], index: 7, kind: input, shape index: {}]   ;;  %s2116_s8 = inlined_call_operand.vmem [shape: f32[1,128], index: 8, kind: input, shape index: {}]   ;;  %s2117_s9 = inlined_call_operand.hbm [shape: f32[128,128], index: 9, kind: output, shape index: {}]  }
   0x1   :  { %16 = vsyncpa [#allocation3 + $0x1], 0  ;;  %s1614_s30 = smov 0   ;;  %s1616_s10 = smov 0  }
   0x2   :  { %s1618_s11 = smov 0   ;;  %s1620_s12 = smov 0  }
   0x3 LB: > { %s1635_s13 = sadd.s32 4294967295, %s1557_s12   ;;  %s1197_s14 = sadd.s32 4294967294, %s1557_s12   ;;  %s1557_s12 = sphi %s1620_s12, %s2123_s12   ;;  %s1553_s11 = sphi %s1618_s11, %s2122_s11   ;;  %s1549_s10 = sphi %s1616_s10, %s2121_s10   ;;  %s1545_s30 = sphi %s1614_s30, %s2120_s30  }
   0x4   : > { %s1639_s15 = sadd.s32 1, %s1557_s12   ;;  %s228_s16 = sadd.s32 1, %s1553_s11 }
   0x5   : > { %s225_s17 = ssub.s32 %s1557_s12, %s1639_s15  ;;  %p238_p0 = scmp.ne.s32.totalorder %s1553_s11, %s1549_s10 }
   0x6   : > { %p226_p1 = scmp.eq.s32.totalorder %s225_s17, 0  ;;  %p239_p2 = scmp.eq.s32.totalorder %s1635_s13, 1 }
   0x7   : > { %p244_p3 = scmp.ne.s32.totalorder %s1549_s10, %s1545_s30  ;;  %p245_p4 = scmp.eq.s32.totalorder %s1197_s14, 1 }
   0x8   : > { %s1650_s18 = scalar_select %p226_p1, %s1553_s11, %s228_s16  }
   0x9   : > { %p1652_p5 = por %p239_p2, %p238_p0  ;;  %p1656_p6 = por %p245_p4, %p244_p3 }
   0xa   : > { %p1200_p7 = scmp.ge.s32.totalorder %s1557_s12, 1  ;;  %p302_p8 = scmp.lt.s32.totalorder %s1557_s12, 3 }
   0xc   : > { %p303_p9 = pnand %p1200_p7, %p302_p8 }
   0xd   : > { %s1202_s16 = sshll.u32 (!%p303_p9), %s1635_s13, 3  ;;  %s1560_s27 = smov (!%p303_p9), 32  }
   0xe   : > { %306 = sbr.rel (%p303_p9) target bundleno = 724 (0x2d4), region = 56  ;;  %p344_p10 = scmp.lt.s32.totalorder (!%p303_p9), %s1202_s16, 15 }
   0xf   : > { %s1223_s23 = sshll.u32 (!%p303_p9), %s1635_s13, 10  ;;  %s1561_s17 = smov (!%p303_p9), [#allocation2]  }
  0x13   : > { %v515_v0 = vld [vmem:[%s2112_s4 + $0x78] sm:$0xff]  ;;  %v514_v1 = vld [vmem:[%s2112_s4 + $0x70] sm:$0xff]  ;;  %v513_v2 = vld [vmem:[%s2112_s4 + $0x68] sm:$0xff]  ;;  %s2125_s16 = smov (!%p344_p10, %s1202_s16), 15  ;;  %v1559_v48 = vmov 32   ;;  %vm916_vm0 = vcmask 261120  }
  0x14   : > { %1332 = vmatprep.subr.mxu1 %v515_v0  ;;  %v387_v3 = vld [vmem:[%s2110_s2 + $0x78] sm:$0xff]  ;;  %v386_v4 = vld [vmem:[%s2110_s2 + $0x70] sm:$0xff]  ;;  %v512_v5 = vld [vmem:[%s2112_s4 + $0x60] sm:$0xff]  ;;  %s1203_s22 = sshll.u32 %s2125_s16, 3  ;;  %1463 = vset.pattern.permute.xlu1 %v1559_v48  ;;  %vm948_vm1 = vcmask 523264   ;;  %s1501_s16 = sshll.u32 %s1561_s17, 4  ;;  %s1502_s16 = int_to_ptr.vmem [resolvable:$false] %s1501_s16 }
  0x15   : > { %1333 = vmatpush3.msra.mxu1 %v515_v0  ;;  %1288 = vmatprep.subr.mxu0 %v387_v3  ;;  %v385_v6 = vld [vmem:[%s2110_s2 + $0x68] sm:$0xff]  ;;  %v511_v7 = vld [vmem:[%s2112_s4 + $0x58] sm:$0xff]  ;;  %v384_v8 = vld [vmem:[%s2110_s2 + $0x60] sm:$0xff]  ;;  %s1728_s29 = scalar_lea.vmem %s2109_s1, %s1203_s22  ;;  %s1772_s28 = scalar_lea.vmem %s2108_s0, %s1203_s22 }
  0x16   : > { %1334 = vmatprep.subr.mxu1 %v514_v1  ;;  %1289 = vmatpush3.msra.mxu0 %v387_v3  ;;  %v510_v9 = vld [vmem:[%s2112_s4 + $0x50] sm:$0xff]  ;;  %v383_v10 = vld [vmem:[%s2110_s2 + $0x58] sm:$0xff]  ;;  %v509_v11 = vld [vmem:[%s2112_s4 + $0x48] sm:$0xff]  ;;  %s1503_s22 = scalar_lea.vmem %s1502_s16, 2048 }
  0x17   : > { %1335 = vmatpush3.msra.mxu1 %v514_v1  ;;  %1290 = vmatprep.subr.mxu0 %v386_v4  ;;  %v382_v12 = vld [vmem:[%s2110_s2 + $0x50] sm:$0xff]  ;;  %v508_v13 = vld [vmem:[%s2112_s4 + $0x40] sm:$0xff]  ;;  %v381_v14 = vld [vmem:[%s2110_s2 + $0x48] sm:$0xff] }
  0x18   : > { %1336 = vmatprep.subr.mxu1 %v513_v2  ;;  %1291 = vmatpush3.msra.mxu0 %v386_v4  ;;  %v507_v15 = vld [vmem:[%s2112_s4 + $0x38] sm:$0xff]  ;;  %v380_v16 = vld [vmem:[%s2110_s2 + $0x40] sm:$0xff]  ;;  %v506_v17 = vld [vmem:[%s2112_s4 + $0x30] sm:$0xff] }
  0x19   : > { %1337 = vmatpush3.msra.mxu1 %v513_v2  ;;  %1292 = vmatprep.subr.mxu0 %v385_v6  ;;  %v379_v18 = vld [vmem:[%s2110_s2 + $0x38] sm:$0xff]  ;;  %v505_v19 = vld [vmem:[%s2112_s4 + $0x28] sm:$0xff]  ;;  %v378_v20 = vld [vmem:[%s2110_s2 + $0x30] sm:$0xff] }
  0x1a   : > { %1338 = vmatprep.subr.mxu1 %v512_v5  ;;  %1293 = vmatpush3.msra.mxu0 %v385_v6  ;;  %v504_v21 = vld [vmem:[%s2112_s4 + $0x20] sm:$0xff]  ;;  %v377_v23 = vld [vmem:[%s2110_s2 + $0x28] sm:$0xff]  ;;  %v503_v24 = vld [vmem:[%s2112_s4 + $0x18] sm:$0xff] }
  0x1b   : > { %1339 = vmatpush3.msra.mxu1 %v512_v5  ;;  %1294 = vmatprep.subr.mxu0 %v384_v8  ;;  %v364_v22 = vld [vmem:[%s1728_s29] sm:$0xff]  ;;  %v502_v26 = vld [vmem:[%s2112_s4 + $0x10] sm:$0xff]  ;;  %v375_v27 = vld [vmem:[%s2110_s2 + $0x18] sm:$0xff] }
  0x1c   : > { %1340 = vmatprep.subr.mxu1 %v511_v7  ;;  %1295 = vmatpush3.msra.mxu0 %v384_v8  ;;  %v376_v25 = vld [vmem:[%s2110_s2 + $0x20] sm:$0xff]  ;;  %v501_v28 = vld [vmem:[%s2112_s4 + $0x8] sm:$0xff]  ;;  %v374_v29 = vld [vmem:[%s2110_s2 + $0x10] sm:$0xff] }
  0x1d   : > { %1341 = vmatpush3.msra.mxu1 %v511_v7  ;;  %1296 = vmatprep.subr.mxu0 %v383_v10  ;;  %v500_v30 = vld [vmem:[%s2112_s4] sm:$0xff]  ;;  %v373_v31 = vld [vmem:[%s2110_s2 + $0x8] sm:$0xff]  ;;  %v366_v33 = vld [vmem:[%s1728_s29 + $0x10] sm:$0xff] }
  0x1e   : > { %1342 = vmatprep.subr.mxu1 %v510_v9  ;;  %1297 = vmatpush3.msra.mxu0 %v383_v10  ;;  %v365_v32 = vld [vmem:[%s1728_s29 + $0x8] sm:$0xff]  ;;  %v372_v34 = vld [vmem:[%s2110_s2] sm:$0xff]  ;;  %v367_v37 = vld [vmem:[%s1728_s29 + $0x18] sm:$0xff] }
  0x1f   : > { %1343 = vmatpush3.msra.mxu1 %v510_v9  ;;  %1298 = vmatprep.subr.mxu0 %v382_v12  ;;  %v356_v35 = vld [vmem:[%s1772_s28] sm:$0xff]  ;;  %v357_v36 = vld [vmem:[%s1772_s28 + $0x8] sm:$0xff]  ;;  %v358_v38 = vld [vmem:[%s1772_s28 + $0x10] sm:$0xff] }
  0x20   : > { %1344 = vmatprep.subr.mxu1 %v509_v11  ;;  %1299 = vmatpush3.msra.mxu0 %v382_v12  ;;  %v368_v39 = vld [vmem:[%s1728_s29 + $0x20] sm:$0xff]  ;;  %v359_v40 = vld [vmem:[%s1772_s28 + $0x18] sm:$0xff]  ;;  %v369_v41 = vld [vmem:[%s1728_s29 + $0x28] sm:$0xff] }
  0x21   : > { %1345 = vmatpush3.msra.mxu1 %v509_v11  ;;  %1300 = vmatprep.subr.mxu0 %v381_v14  ;;  %v360_v42 = vld [vmem:[%s1772_s28 + $0x20] sm:$0xff]  ;;  %v370_v43 = vld [vmem:[%s1728_s29 + $0x30] sm:$0xff]  ;;  %v361_v44 = vld [vmem:[%s1772_s28 + $0x28] sm:$0xff] }
  0x22   : > { %1346 = vmatprep.subr.mxu1 %v508_v13  ;;  %1301 = vmatpush3.msra.mxu0 %v381_v14  ;;  %v371_v45 = vld [vmem:[%s1728_s29 + $0x38] sm:$0xff]  ;;  %v362_v46 = vld [vmem:[%s1772_s28 + $0x30] sm:$0xff]  ;;  %v1207_v49 = vld [vmem:[%s2113_s5] ss:$0 sm:$0xff] }
  0x23   : > { %1347 = vmatpush3.msra.mxu1 %v508_v13  ;;  %1302 = vmatprep.subr.mxu0 %v380_v16  ;;  %v363_v47 = vld [vmem:[%s1772_s28 + $0x38] sm:$0xff]  ;;  %v1206_v9 = vld [vmem:[%s2111_s3] ss:$0 sm:$0xff]  ;;  %s340_s28 = sand.u32 1, %s1549_s10  }
  0x24   : > { %1348 = vmatprep.subr.mxu1 %v507_v15  ;;  %1303 = vmatpush3.msra.mxu0 %v380_v16  ;;  %s1201_s29 = sshll.u32 %s340_s28, 6  ;;  %s2068_s13 = scalar_lea.sflag [#allocation3], %s340_s28 }
  0x25   : > { %1349 = vmatpush3.msra.mxu1 %v507_v15  ;;  %1304 = vmatprep.subr.mxu0 %v379_v18  ;;  %s2035_s21 = scalar_lea.vmem [#allocation2], %s1201_s29 }
  0x26   : > { %1350 = vmatprep.subr.mxu1 %v506_v17  ;;  %1305 = vmatpush3.msra.mxu0 %v379_v18  ;;  %s1123_s24 = sshll.u32 %s2035_s21, 4  ;;  %s2061_s24 = int_to_ptr.vmem [resolvable:$true] %s1123_s24 }
  0x27   : > { %1351 = vmatpush3.msra.mxu1 %v506_v17  ;;  %1306 = vmatprep.subr.mxu0 %v378_v20  ;;  %s1497_s14 = scalar_lea.vmem %s2061_s24, 1024  ;;  %p1504_p0 = scmp.lt.s32.totalorder %s2061_s24, %s1502_s16 }
  0x28   : > { %1352 = vmatprep.subr.mxu1 %v505_v19  ;;  %1307 = vmatpush3.msra.mxu0 %v378_v20  ;;  %p1498_p11 = scmp.ne.s32.totalorder %s2061_s24, %s1497_s14  ;;  %p1505_p1 = scmp.lt.s32.totalorder %s1503_s22, %s1497_s14 }
  0x29   : > { %1353 = vmatpush3.msra.mxu1 %v505_v19  ;;  %1364 = vmatprep.mubr.f32.mxu1 %v364_v22 }
  0x2a   : > { %1354 = vmatprep.subr.mxu1 %v504_v21  ;;  %1308 = vmatprep.subr.mxu0 %v377_v23  ;;  %p1499_p12 = pnand %p1498_p11, %p1652_p5  ;;  %p1506_p2 = por %p1505_p1, %p1504_p0 }
  0x2b   : > { %1355 = vmatpush3.msra.mxu1 %v504_v21  ;;  %1309 = vmatpush3.msra.mxu0 %v377_v23 }
  0x2c   : > { %1356 = vmatprep.subr.mxu1 %v503_v24  ;;  %1310 = vmatprep.subr.mxu0 %v376_v25  ;;  %p1500_p13 = pneg %p1499_p12 }
  0x2d   : > { %1357 = vmatpush3.msra.mxu1 %v503_v24  ;;  %1311 = vmatpush3.msra.mxu0 %v376_v25 }
  0x2e   : > { %1358 = vmatprep.subr.mxu1 %v502_v26  ;;  %1312 = vmatprep.subr.mxu0 %v375_v27  ;;  %p1507_p3 = pnand %p1506_p2, %p1500_p13 }
  0x2f   : > { %1359 = vmatpush3.msra.mxu1 %v502_v26  ;;  %1313 = vmatpush3.msra.mxu0 %v375_v27 }
  0x30   : > { %1360 = vmatprep.subr.mxu1 %v501_v28  ;;  %1314 = vmatprep.subr.mxu0 %v374_v29 }
  0x31   : > { %1361 = vmatpush3.msra.mxu1 %v501_v28  ;;  %1315 = vmatpush3.msra.mxu0 %v374_v29 }
  0x32   : > { %1362 = vmatprep.subr.mxu1 %v500_v30  ;;  %1316 = vmatprep.subr.mxu0 %v373_v31 }
  0x33   : > { %1363 = vmatpush3.msra.mxu1 %v500_v30  ;;  %1317 = vmatpush3.msra.mxu0 %v373_v31 }
  0x34   : > { %1365 = vmatmul.mubr.f32.vlgmr.msra.gmra.mxu1 %v365_v32  ;;  %1318 = vmatprep.subr.mxu0 %v372_v34 }
  0x35   : > { %1367 = vmatprep.mubr.f32.mxu1 %v366_v33  ;;  %1319 = vmatpush3.msra.mxu0 %v372_v34 }
  0x36   : > { %1320 = vmatprep.mubr.f32.mxu0 %v356_v35  ;;  %1464 = vset.pattern.permute.xlu0 %v1559_v48  ;;  %v932_v35 = vld [vmem:[%s2114_s6 + $0x38] sm:$0xff] }
  0x37   : > { %1321 = vmatmul.mubr.f32.vlgmr.msra.gmra.mxu0 %v357_v36  ;;  %v931_v36 = vld [vmem:[%s2114_s6 + $0x30] sm:$0xff]  ;;  %1376 = vmatprep.subr.mxu0 %v932_v35 }
  0x38   : > { %1368 = vmatmul.mubr.f32.gmra.mxu1 %v367_v37  ;;  %1323 = vmatprep.mubr.f32.mxu0 %v358_v38  ;;  %v930_v37 = vld [vmem:[%s2114_s6 + $0x28] sm:$0xff]  ;;  %v929_v38 = vld [vmem:[%s2114_s6 + $0x20] sm:$0xff] }
  0x39   : > { %1370 = vmatprep.mubr.f32.mxu1 %v368_v39  ;;  %1404 = vmatprep.subr.mxu1 %v932_v35  ;;  %v928_v39 = vld [vmem:[%s2114_s6 + $0x18] sm:$0xff] }
  0x3a   : > { %1377 = vmatpush3.msra.mxu0 %v932_v35  ;;  %1412 = vmatpush3.msra.mxu1 %v932_v35 }
  0x3b   : > { %1324 = vmatmul.mubr.f32.gmra.mxu0 %v359_v40  ;;  %1378 = vmatprep.subr.mxu0 %v931_v36 }
  0x3c   : > { %1371 = vmatmul.mubr.f32.gmra.mxu1 %v369_v41  ;;  %1326 = vmatprep.mubr.f32.mxu0 %v360_v42 }
  0x3d   : > { %1373 = vmatprep.mubr.f32.mxu1 %v370_v43  ;;  %1405 = vmatprep.subr.mxu1 %v931_v36 }
  0x3e   : > { %1379 = vmatpush3.msra.mxu0 %v931_v36  ;;  %1413 = vmatpush3.msra.mxu1 %v931_v36 }
  0x3f   : > { %1327 = vmatmul.mubr.f32.gmra.mxu0 %v361_v44  ;;  %1380 = vmatprep.subr.mxu0 %v930_v37 }
  0x40   : > { %1374 = vmatmul.mubr.f32.gmra.mxu1 %v371_v45  ;;  %1329 = vmatprep.mubr.f32.mxu0 %v362_v46 }
  0x41   : > { %1406 = vmatprep.subr.mxu1 %v930_v37  ;;  %1381 = vmatpush3.msra.mxu0 %v930_v37 }
  0x42   : > { %1414 = vmatpush3.msra.mxu1 %v930_v37  ;;  %1382 = vmatprep.subr.mxu0 %v929_v38  ;;  %v925_v37 = vld [vmem:[%s2114_s6] sm:$0xff] }
  0x43   : > { %1330 = vmatmul.mubr.f32.gmra.mxu0 %v363_v47  ;;  %1407 = vmatprep.subr.mxu1 %v929_v38 }
  0x44   : > { %1383 = vmatpush3.msra.mxu0 %v929_v38  ;;  %1415 = vmatpush3.msra.mxu1 %v929_v38 }
  0x45   : > { %1384 = vmatprep.subr.mxu0 %v928_v39  ;;  %1408 = vmatprep.subr.mxu1 %v928_v39 }
  0x46   : > { %1385 = vmatpush3.msra.mxu0 %v928_v39  ;;  %1416 = vmatpush3.msra.mxu1 %v928_v39 }
  0xf4   : > { %v1366_v50 = vpop.f32.mrf.mxu1 }
  0xf5   : > { %v1795_v51 = vadd.f32 %v1366_v50, %v1207_v49 }
  0xf6   : > { %v589_v52 = vpop.f32.mrf.mxu1 }
  0xf7   : > { %v1797_v53 = vadd.f32 %v1207_v49, %v589_v52  ;;  %v637_v54 = vmax.f32 %v1795_v51, 0.0  ;;  %v1322_v55 = vpop.f32.mrf.mxu0  ;;  %v765_v40 = vmul.f32 %v1795_v51, %v1795_v51 }
  0xf8   : > { %v1369_v56 = vpop.f32.mrf.mxu1  ;;  %v1826_v19 = vadd.f32 %v1322_v55, %v1206_v9 }
  0xf9   : > { %843 = vperm.xlu1 %1463, %v637_v54   ;;  %v636_v57 = vmax.f32 %v1797_v53, 0.0  ;;  %v461_v58 = vpop.f32.mrf.mxu0  ;;  %v1814_v11 = vadd.f32 %v1369_v56, %v1207_v49  ;;  %v773_v41 = vmul.f32 %v765_v40, %v1795_v51  ;;  %v764_v42 = vmul.f32 %v1797_v53, %v1797_v53 }
  0xfa   : > { %v599_v59 = vpop.f32.mrf.mxu1  ;;  %v1820_v15 = vadd.f32 %v1206_v9, %v461_v58  ;;  %v629_v27 = vmax.f32 %v1826_v19, 0.0 }
  0xfb   : > { %838 = vperm.xlu0 %1464, %v636_v57   ;;  %v1325_v60 = vpop.f32.mrf.mxu0  ;;  %v1806_v5 = vadd.f32 %v1207_v49, %v599_v59  ;;  %v639_v18 = vmax.f32 %v1814_v11, 0.0  ;;  %v772_v43 = vmul.f32 %v764_v42, %v1797_v53  ;;  %v781_v45 = vmul.f32 0.044715, %v773_v41 }
  0xfc   : > { %v1372_v61 = vpop.f32.mrf.mxu1  ;;  %v628_v22 = vmax.f32 %v1820_v15, 0.0  ;;  %v1838_v29 = vadd.f32 %v1325_v60, %v1206_v9  ;;  %v767_v58 = vmul.f32 %v1814_v11, %v1814_v11 }
  0xfd   : > { %v1801_v62 = vadd.f32 %v1372_v61, %v1207_v49  ;;  %v471_v63 = vpop.f32.mrf.mxu0  ;;  %v638_v13 = vmax.f32 %v1806_v5, 0.0  ;;  %v789_v48 = vadd.f32 %v781_v45, %v1795_v51  ;;  %v766_v50 = vmul.f32 %v1806_v5, %v1806_v5 }
  0xfe   : > { %v609_v0 = vpop.f32.mrf.mxu1  ;;  %v1832_v24 = vadd.f32 %v1206_v9, %v471_v63  ;;  %v631_v34 = vmax.f32 %v1838_v29, 0.0 }
  0xff   : > { %v1803_v1 = vadd.f32 %v1207_v49, %v609_v0  ;;  %v641_v2 = vmax.f32 %v1801_v62, 0.0  ;;  %v1328_v4 = vpop.f32.mrf.mxu0  ;;  %v769_v44 = vmul.f32 %v1801_v62, %v1801_v62  ;;  %v797_v55 = vmul.f32 0.7978846, %v789_v48 }
 0x100   : > { %v1375_v3 = vpop.f32.mrf.mxu1  ;;  %v1828_v20 = vadd.f32 %v1328_v4, %v1206_v9  ;;  %v630_v32 = vmax.f32 %v1832_v24, 0.0  ;;  %v774_v59 = vmul.f32 %v766_v50, %v1806_v5 }
 0x101   : > { %863 = vperm.xlu1 %1463, %v641_v2   ;;  %v640_v6 = vmax.f32 %v1803_v1, 0.0  ;;  %v481_v10 = vpop.f32.mrf.mxu0  ;;  %v1818_v14 = vadd.f32 %v1375_v3, %v1207_v49  ;;  %v777_v46 = vmul.f32 %v769_v44, %v1801_v62  ;;  %v768_v47 = vmul.f32 %v1803_v1, %v1803_v1 }
 0x102   : > { %v619_v7 = vpop.f32.mrf.mxu1  ;;  %v1822_v16 = vadd.f32 %v1206_v9, %v481_v10  ;;  %v633_v26 = vmax.f32 %v1828_v20, 0.0  ;;  %1465 = vtanh.f32 %v797_v55  ;;  %v775_v3 = vmul.f32 %v767_v58, %v1814_v11 }
 0x103   : > { %v1809_v8 = vadd.f32 %v1207_v49, %v619_v7  ;;  %858 = vperm.xlu0 %1464, %v640_v6   ;;  %v643_v17 = vmax.f32 %v1818_v14, 0.0  ;;  %v1331_v23 = vpop.f32.mrf.mxu0  ;;  %v780_v49 = vmul.f32 0.044715, %v772_v43  ;;  %v776_v54 = vmul.f32 %v768_v47, %v1803_v1 }
 0x104   : > { %v632_v21 = vmax.f32 %v1822_v16, 0.0  ;;  %v1834_v25 = vadd.f32 %v1331_v23, %v1206_v9  ;;  %v785_v57 = vmul.f32 0.044715, %v777_v46  ;;  %v771_v60 = vmul.f32 %v1818_v14, %v1818_v14 }
 0x105   : > { %v642_v12 = vmax.f32 %v1809_v8, 0.0  ;;  %v491_v28 = vpop.f32.mrf.mxu0  ;;  %v770_v52 = vmul.f32 %v1809_v8, %v1809_v8  ;;  %v788_v56 = vadd.f32 %v780_v49, %v1797_v53  ;;  %v784_v2 = vmul.f32 0.044715, %v776_v54 }
 0x106   : > { %v1840_v30 = vadd.f32 %v1206_v9, %v491_v28  ;;  %v635_v31 = vmax.f32 %v1834_v25, 0.0  ;;  %v793_v0 = vadd.f32 %v785_v57, %v1801_v62  ;;  %v782_v4 = vmul.f32 0.044715, %v774_v59 }
 0x107   : > { %868 = vperm.xlu1 %1463, %v642_v12   ;;  %848 = vperm.xlu0 %1464, %v638_v13   ;;  %v778_v61 = vmul.f32 %v770_v52, %v1809_v8  ;;  %v796_v63 = vmul.f32 0.7978846, %v788_v56  ;;  %v779_v6 = vmul.f32 %v771_v60, %v1818_v14  ;;  %v792_v9 = vadd.f32 %v784_v2, %v1803_v1 }
 0x108   : > { %v634_v33 = vmax.f32 %v1840_v30, 0.0  ;;  %v801_v7 = vmul.f32 0.7978846, %v793_v0  ;;  %v790_v12 = vadd.f32 %v782_v4, %v1806_v5  ;;  %v783_v13 = vmul.f32 0.044715, %v775_v3 }
 0x109   : > { %1467 = vtanh.f32 %v796_v63  ;;  %v786_v10 = vmul.f32 0.044715, %v778_v61 }
 0x10a   : > { %1469 = vtanh.f32 %v801_v7  ;;  %v791_v23 = vadd.f32 %v783_v13, %v1814_v11 }
 0x10b   : > { %873 = vperm.xlu1 %1463, %v643_v17   ;;  %853 = vperm.xlu0 %1464, %v639_v18   ;;  %v800_v17 = vmul.f32 0.7978846, %v792_v9  ;;  %v794_v18 = vadd.f32 %v786_v10, %v1809_v8 }
 0x10d   : > { %1471 = vtanh.f32 %v800_v17 }
 0x10f   : > { %738 = vperm.xlu1 %1463, %v632_v21   ;;  %718 = vperm.xlu0 %1464, %v628_v22   ;;  %v787_v21 = vmul.f32 0.044715, %v779_v6  ;;  %v798_v22 = vmul.f32 0.7978846, %v790_v12  ;;  %v1466_v28 = vpop.eup %1465 }
 0x111   : > { %1473 = vtanh.f32 %v798_v22 }
 0x113   : > { %743 = vperm.xlu1 %1463, %v633_v26   ;;  %723 = vperm.xlu0 %1464, %v629_v27   ;;  %v802_v26 = vmul.f32 0.7978846, %v794_v18  ;;  %v795_v27 = vadd.f32 %v787_v21, %v1818_v14 }
 0x115   : > { %1475 = vtanh.f32 %v802_v26  ;;  %v803_v35 = vmul.f32 0.7978846, %v795_v27  ;;  %v644_v27 = vmul.f32 %v1820_v15, %v1820_v15 }
 0x116   : > { %v1468_v36 = vpop.eup %1467 }
 0x117   : > { %753 = vperm.xlu1 %1463, %v635_v31   ;;  %728 = vperm.xlu0 %1464, %v630_v32   ;;  %v799_v31 = vmul.f32 0.7978846, %v791_v23  ;;  %v927_v32 = vld [vmem:[%s2114_s6 + $0x10] sm:$0xff]  ;;  %v812_v39 = vadd.f32 1.0, %v1468_v36  ;;  %v1470_v40 = vpop.eup %1469 }
 0x118   : > { %1386 = vmatprep.subr.mxu0 %v927_v32  ;;  %1409 = vmatprep.subr.mxu1 %v927_v32  ;;  %v817_v43 = vadd.f32 1.0, %v1470_v40 }
 0x119   : > { %1387 = vmatpush3.msra.mxu0 %v927_v32  ;;  %1417 = vmatpush3.msra.mxu1 %v927_v32  ;;  %1477 = vtanh.f32 %v799_v31  ;;  %v820_v42 = vmul.f32 0.5, %v812_v39  ;;  %v648_v31 = vmul.f32 %v1822_v16, %v1822_v16 }
 0x11a   : > { %1479 = vtanh.f32 %v803_v35  ;;  %v1472_v44 = vpop.eup %1471  ;;  %v825_v50 = vmul.f32 0.5, %v817_v43  ;;  %v646_v35 = vmul.f32 %v1832_v24, %v1832_v24  ;;  %v651_v43 = vmul.f32 %v1834_v25, %v1834_v25 }
 0x11b   : > { %748 = vperm.xlu1 %1463, %v634_v33   ;;  %733 = vperm.xlu0 %1464, %v631_v34   ;;  %v926_v33 = vld [vmem:[%s2114_s6 + $0x8] sm:$0xff]  ;;  %v813_v34 = vadd.f32 1.0, %v1466_v28  ;;  %v828_v49 = vmul.f32 %v820_v42, %v1797_v53  ;;  %v816_v52 = vadd.f32 1.0, %v1472_v44  ;;  %v652_v28 = vmul.f32 %v644_v27, %v1820_v15 }
 0x11c   : > { %1388 = vmatprep.subr.mxu0 %v926_v33  ;;  %1410 = vmatprep.subr.mxu1 %v926_v33  ;;  %v833_v57 = vmul.f32 %v825_v50, %v1801_v62  ;;  %v656_v36 = vmul.f32 %v648_v31, %v1822_v16  ;;  %v654_v42 = vmul.f32 %v646_v35, %v1832_v24 }
 0x11d   : > { %1389 = vmatpush3.msra.mxu0 %v926_v33  ;;  %1418 = vmatpush3.msra.mxu1 %v926_v33  ;;  %v821_v38 = vmul.f32 0.5, %v813_v34  ;;  %v824_v58 = vmul.f32 0.5, %v816_v52  ;;  %v660_v32 = vmul.f32 0.044715, %v652_v28  ;;  %v649_v33 = vmul.f32 %v1828_v20, %v1828_v20 }
 0x11e   : > { %1390 = vmatprep.subr.mxu0 %v925_v37  ;;  %1411 = vmatprep.subr.mxu1 %v925_v37  ;;  %v1474_v47 = vpop.eup %1473 }
 0x11f   : > { %1391 = vmatpush3.msra.mxu0 %v925_v37  ;;  %1419 = vmatpush3.msra.mxu1 %v925_v37  ;;  %v829_v41 = vmul.f32 %v821_v38, %v1795_v51  ;;  %v814_v55 = vadd.f32 1.0, %v1474_v47  ;;  %v832_v3 = vmul.f32 %v824_v58, %v1803_v1  ;;  %v650_v37 = vmul.f32 %v1840_v30, %v1840_v30 }
 0x120   : > { %v668_v38 = vadd.f32 %v660_v32, %v1820_v15  ;;  %v657_v39 = vmul.f32 %v649_v33, %v1828_v20 }
 0x121   : > { %v822_v63 = vmul.f32 0.5, %v814_v55  ;;  %v658_v44 = vmul.f32 %v650_v37, %v1840_v30 }
 0x122   : > { %v1476_v54 = vpop.eup %1475  ;;  %v676_v47 = vmul.f32 0.7978846, %v668_v38 }
 0x123   : > { %v818_v59 = vadd.f32 1.0, %v1476_v54  ;;  %v830_v62 = vmul.f32 %v822_v63, %v1806_v5  ;;  %v662_v54 = vmul.f32 0.044715, %v654_v42 }
 0x124   : > { %1481 = vtanh.f32 %v676_v47 }
 0x125   : > { %v826_v4 = vmul.f32 0.5, %v818_v59  ;;  %v670_v59 = vadd.f32 %v662_v54, %v1832_v24 }
 0x126   : > { %v1478_v56 = vpop.eup %1477 }
 0x127   : > { %v1480_v60 = vpop.eup %1479  ;;  %v815_v0 = vadd.f32 1.0, %v1478_v56  ;;  %v834_v13 = vmul.f32 %v826_v4, %v1809_v8  ;;  %v666_v56 = vmul.f32 0.044715, %v658_v44  ;;  %v678_v4 = vmul.f32 0.7978846, %v670_v59 }
 0x128   : > { %v819_v6 = vadd.f32 1.0, %v1480_v60 }
 0x129   : > { %v823_v9 = vmul.f32 0.5, %v815_v0  ;;  %v674_v0 = vadd.f32 %v666_v56, %v1840_v30 }
 0x12a   : > { %v827_v1 = vmul.f32 0.5, %v819_v6 }
 0x12b   : > { %v831_v21 = vmul.f32 %v823_v9, %v1814_v11  ;;  %v645_v11 = vmul.f32 %v1826_v19, %v1826_v19  ;;  %v682_v9 = vmul.f32 0.7978846, %v674_v0 }
 0x12c   : > { %v835_v23 = vmul.f32 %v827_v1, %v1818_v14 }
 0x12d   : > { %v653_v14 = vmul.f32 %v645_v11, %v1826_v19 }
 0x12f   : > { %v661_v34 = vmul.f32 0.044715, %v653_v14 }
 0x131   : > { %v669_v40 = vadd.f32 %v661_v34, %v1826_v19 }
 0x133   : > { %v677_v50 = vmul.f32 0.7978846, %v669_v40 }
 0x135   : > { %1483 = vtanh.f32 %v677_v50 }
 0x174   : > { %v1903_v45 = vpop.permute.xlu1 %843 }
 0x175   : > { %v877_v46 = vmul.f32 %v1903_v45, %v829_v41  ;;  %v647_v41 = vmul.f32 %v1838_v29, %v1838_v29 }
 0x176   : > { %v1906_v48 = vpop.permute.xlu0 %838 }
 0x177   : > { %894 = vrot.lane.b32.xlu0 %v877_v46, %s1560_s27  ;;  %v876_v51 = vmul.f32 %v1906_v48, %v828_v49  ;;  %v664_v46 = vmul.f32 0.044715, %v656_v36  ;;  %v665_v49 = vmul.f32 0.044715, %v657_v39  ;;  %v655_v52 = vmul.f32 %v647_v41, %v1838_v29 }
 0x179   : > { %v672_v55 = vadd.f32 %v664_v46, %v1822_v16  ;;  %v673_v58 = vadd.f32 %v665_v49, %v1828_v20  ;;  %v663_v60 = vmul.f32 0.044715, %v655_v52 }
 0x17b   : > { %892 = vrot.lane.b32.xlu0 %v876_v51, %s1560_s27  ;;  %v659_v51 = vmul.f32 %v651_v43, %v1834_v25  ;;  %v671_v6 = vadd.f32 %v663_v60, %v1838_v29 }
 0x17c   : > { %v1913_v61 = vpop.permute.xlu1 %863 }
 0x17d   : > { %v881_v53 = vmul.f32 %v1913_v61, %v833_v57  ;;  %v667_v63 = vmul.f32 0.044715, %v659_v51 }
 0x17e   : > { %v1916_v2 = vpop.permute.xlu0 %858 }
 0x17f   : > { %902 = vrot.lane.b32.xlu1 %v881_v53, %s1560_s27  ;;  %v880_v7 = vmul.f32 %v1916_v2, %v832_v3  ;;  %v680_v53 = vmul.f32 0.7978846, %v672_v55  ;;  %v681_v3 = vmul.f32 0.7978846, %v673_v58 }
 0x181   : > { %1485 = vtanh.f32 %v680_v53 }
 0x182   : > { %v1922_v10 = vpop.permute.xlu1 %868  ;;  %v1924_v12 = vpop.permute.xlu0 %848  ;;  %1487 = vtanh.f32 %v681_v3 }
 0x183   : > { %v878_v17 = vmul.f32 %v1924_v12, %v830_v62  ;;  %900 = vrot.lane.b32.xlu1 %v880_v7, %s1560_s27  ;;  %v882_v18 = vmul.f32 %v1922_v10, %v834_v13  ;;  %v675_v62 = vadd.f32 %v667_v63, %v1834_v25  ;;  %1489 = vtanh.f32 %v678_v4 }
 0x184   : > { %1491 = vtanh.f32 %v682_v9 }
 0x185   : > { %896 = vrot.lane.b32.xlu0 %v878_v17, %s1560_s27  ;;  %v679_v17 = vmul.f32 0.7978846, %v671_v6  ;;  %v683_v1 = vmul.f32 0.7978846, %v675_v62 }
 0x186   : > { %v1932_v22 = vpop.permute.xlu1 %873  ;;  %v1934_v5 = vpop.permute.xlu0 %853 }
 0x187   : > { %v879_v26 = vmul.f32 %v1934_v5, %v831_v21  ;;  %904 = vrot.lane.b32.xlu1 %v882_v18, %s1560_s27  ;;  %v883_v8 = vmul.f32 %v1932_v22, %v835_v23  ;;  %v1482_v18 = vpop.eup %1481  ;;  %1493 = vtanh.f32 %v679_v17 }
 0x188   : > { %v1484_v23 = vpop.eup %1483  ;;  %1495 = vtanh.f32 %v683_v1 }
 0x189   : > { %898 = vrot.lane.b32.xlu0 %v879_v26, %s1560_s27  ;;  %v693_v27 = vadd.f32 1.0, %v1484_v23 }
 0x18a   : > { %v1969_v57 = vpop.permute.xlu0 %718  ;;  %v1978_v13 = vpop.permute.xlu1 %738 }
 0x18b   : > { %906 = vrot.lane.b32.xlu1 %v883_v8, %s1560_s27  ;;  %v692_v8 = vadd.f32 1.0, %v1482_v18  ;;  %v701_v31 = vmul.f32 0.5, %v693_v27  ;;  %s2059_s27 = scalar_lea.hbm %s2117_s9, %s1223_s23 }
 0x18d   : > { %v700_v28 = vmul.f32 0.5, %v692_v8  ;;  %v709_v40 = vmul.f32 %v701_v31, %v1826_v19 }
 0x18e   : > { %v1975_v7 = vpop.permute.xlu0 %723  ;;  %v1982_v26 = vpop.permute.xlu1 %743 }
 0x18f   : > { %v1486_v14 = vpop.eup %1485  ;;  %v708_v37 = vmul.f32 %v700_v28, %v1820_v15  ;;  %v757_v44 = vmul.f32 %v1975_v7, %v709_v40 }
 0x190   : > { %v1488_v33 = vpop.eup %1487  ;;  %v696_v36 = vadd.f32 1.0, %v1486_v14 }
 0x191   : > { %v1490_v34 = vpop.eup %1489  ;;  %v697_v39 = vadd.f32 1.0, %v1488_v33  ;;  %v756_v41 = vmul.f32 %v1969_v57, %v708_v37 }
 0x192   : > { %v1980_v21 = vpop.permute.xlu0 %728  ;;  %v1986_v32 = vpop.permute.xlu1 %753  ;;  %v694_v42 = vadd.f32 1.0, %v1490_v34  ;;  %v704_v49 = vmul.f32 0.5, %v696_v36 }
 0x193   : > { %v1492_v38 = vpop.eup %1491  ;;  %v705_v54 = vmul.f32 0.5, %v697_v39 }
 0x194   : > { %v1494_v43 = vpop.eup %1493  ;;  %v698_v50 = vadd.f32 1.0, %v1492_v38  ;;  %v702_v19 = vmul.f32 0.5, %v694_v42  ;;  %v712_v58 = vmul.f32 %v704_v49, %v1822_v16 }
 0x195   : > { %v1496_v15 = vpop.eup %1495  ;;  %v695_v55 = vadd.f32 1.0, %v1494_v43  ;;  %v713_v53 = vmul.f32 %v705_v54, %v1828_v20 }
 0x196   : > { %v1984_v11 = vpop.permute.xlu0 %733  ;;  %v1992_v46 = vpop.permute.xlu1 %748  ;;  %v699_v59 = vadd.f32 1.0, %v1496_v15  ;;  %v706_v60 = vmul.f32 0.5, %v698_v50  ;;  %v760_v63 = vmul.f32 %v1978_v13, %v712_v58  ;;  %v710_v0 = vmul.f32 %v702_v19, %v1832_v24 }
 0x197   : > { %v703_v3 = vmul.f32 0.5, %v695_v55  ;;  %v761_v4 = vmul.f32 %v1982_v26, %v713_v53 }
 0x198   : > { %v707_v62 = vmul.f32 0.5, %v699_v59  ;;  %v758_v9 = vmul.f32 %v1980_v21, %v710_v0  ;;  %v714_v17 = vmul.f32 %v706_v60, %v1840_v30 }
 0x199   : > { %v711_v24 = vmul.f32 %v703_v3, %v1838_v29 }
 0x19a   : > { %v762_v18 = vmul.f32 %v1992_v46, %v714_v17  ;;  %v715_v30 = vmul.f32 %v707_v62, %v1834_v25  ;;  %v1217_v25 = vld [vmem:[%s2116_s8] ss:$0 sm:$0xff] }
 0x19b   : > { %v759_v27 = vmul.f32 %v1984_v11, %v711_v24  ;;  %v1086_v38 = vmul.f32 %v1217_v25, %v1903_v45  ;;  %v1085_v42 = vmul.f32 %v1217_v25, %v1906_v48  ;;  %v1090_v45 = vmul.f32 %v1217_v25, %v1913_v61 }
 0x19c   : > { %v763_v29 = vmul.f32 %v1986_v32, %v715_v30  ;;  %v1088_v55 = vmul.f32 %v1217_v25, %v1934_v5  ;;  %v1087_v58 = vmul.f32 %v1217_v25, %v1924_v12  ;;  %v1091_v12 = vmul.f32 %v1217_v25, %v1922_v10 }
 0x1e9   : > { %v895_v35 = vpop.permute.xlu0 %894 }
 0x1ea   : > { %v918_v51 = vsel %vm916_vm0, %v757_v44, %v895_v35  ;;  %v1208_v35 = vld [vmem:[%s2115_s7] ss:$0 sm:$0xff] }
 0x1eb   : > { %v941_v36 = vmul.f32 %v1208_v35, %v1975_v7  ;;  %v940_v39 = vmul.f32 %v1208_v35, %v1969_v57  ;;  %v944_v57 = vmul.f32 %v1208_v35, %v1978_v13  ;;  %v947_v61 = vmul.f32 %v1208_v35, %v1986_v32 }
 0x1ec   : > { %v942_v13 = vmul.f32 %v1208_v35, %v1980_v21  ;;  %v946_v60 = vmul.f32 %v1208_v35, %v1992_v46 }
 0x1ed   : > { %v893_v47 = vpop.permute.xlu0 %892 }
 0x1ee   : > { %v917_v52 = vsel %vm916_vm0, %v756_v41, %v893_v47  ;;  %v945_v47 = vmul.f32 %v1208_v35, %v1982_v26 }
 0x1ef   : > { %1392 = vmatprep.mubr.msk.f32.mxu0 %vm948_vm1, %v917_v52  ;;  %v1089_v52 = vmul.f32 %v1217_v25, %v1916_v2  ;;  %v1092_v2 = vmul.f32 %v1217_v25, %v1932_v22 }
 0x1f0   : > { %1393 = vmatmul.mubr.msk.f32.vlgmr.msra.gmra.mxu0 %vm948_vm1, %v918_v51  ;;  %v943_v51 = vmul.f32 %v1208_v35, %v1984_v11 }
 0x1f1   : > { %v903_v56 = vpop.permute.xlu1 %902 }
 0x1f2   : > { %v922_v16 = vsel %vm916_vm0, %v761_v4, %v903_v56 }
 0x1f5   : > { %v901_v6 = vpop.permute.xlu1 %900 }
 0x1f6   : > { %v921_v1 = vsel %vm916_vm0, %v760_v63, %v901_v6 }
 0x1f7   : > { %1398 = vmatprep.mubr.msk.f32.mxu1 %vm948_vm1, %v921_v1  ;;  %v897_v20 = vpop.permute.xlu0 %896 }
 0x1f8   : > { %v919_v23 = vsel %vm916_vm0, %v758_v9, %v897_v20  ;;  %1399 = vmatmul.mubr.msk.f32.vlgmr.msra.gmra.mxu1 %vm948_vm1, %v922_v16 }
 0x1f9   : > { %v905_v8 = vpop.permute.xlu1 %904  ;;  %1395 = vmatprep.mubr.msk.f32.mxu0 %vm948_vm1, %v919_v23 }
 0x1fa   : > { %v923_v28 = vsel %vm916_vm0, %v762_v18, %v905_v8 }
 0x1fb   : > { %1401 = vmatprep.mubr.msk.f32.mxu1 %vm948_vm1, %v923_v28  ;;  %v899_v14 = vpop.permute.xlu0 %898 }
 0x1fc   : > { %v920_v31 = vsel %vm916_vm0, %v759_v27, %v899_v14 }
 0x1fd   : > { %v907_v33 = vpop.permute.xlu1 %906  ;;  %1396 = vmatmul.mubr.msk.f32.gmra.mxu0 %vm948_vm1, %v920_v31 }
 0x1fe   : > { %v924_v34 = vsel %vm916_vm0, %v763_v29, %v907_v33 }
 0x1ff   : > { %1402 = vmatmul.mubr.msk.f32.gmra.mxu1 %vm948_vm1, %v924_v34 }
 0x2b0   : > { %v1394_v37 = vpop.f32.mrf.mxu0 }
 0x2b1   : > { %v1045_v40 = vadd.f32 %v1394_v37, %v941_v36 }
 0x2b2   : > { %v1039_v41 = vpop.f32.mrf.mxu0 }
 0x2b3   : > { %v1094_v43 = vadd.f32 %v1086_v38, %v1045_v40  ;;  %v1040_v44 = vadd.f32 %v1039_v41, %v940_v39 }
 0x2b5   : > { %1102 = vst [vmem:[%s2035_s21 + $0x8] sm:$0xff] %v1094_v43  ;;  %v1093_v7 = vadd.f32 %v1085_v42, %v1040_v44 }
 0x2b7   : > { %1101 = vst [vmem:[%s2035_s21] sm:$0xff] %v1093_v7 }
 0x2b8   : > { %v1400_v49 = vpop.f32.mrf.mxu1 }
 0x2b9   : > { %v1065_v50 = vadd.f32 %v1400_v49, %v945_v47 }
 0x2ba   : > { %v1059_v48 = vpop.f32.mrf.mxu1 }
 0x2bb   : > { %v1098_v15 = vadd.f32 %v1090_v45, %v1065_v50  ;;  %v1060_v54 = vadd.f32 %v1059_v48, %v944_v57 }
 0x2bd   : > { %1106 = vst [vmem:[%s2035_s21 + $0x28] sm:$0xff] %v1098_v15  ;;  %v1097_v19 = vadd.f32 %v1089_v52, %v1060_v54  ;;  %v1397_v26 = vpop.f32.mrf.mxu0 }
 0x2be   : > { %v1055_v56 = vadd.f32 %v1397_v26, %v943_v51 }
 0x2bf   : > { %1105 = vst [vmem:[%s2035_s21 + $0x20] sm:$0xff] %v1097_v19  ;;  %v1049_v59 = vpop.f32.mrf.mxu0  ;;  %v1403_v11 = vpop.f32.mrf.mxu1 }
 0x2c0   : > { %v1096_v53 = vadd.f32 %v1088_v55, %v1055_v56  ;;  %v1050_v5 = vadd.f32 %v1049_v59, %v942_v13  ;;  %v1075_v32 = vadd.f32 %v1403_v11, %v947_v61 }
 0x2c1   : > { %v1069_v21 = vpop.f32.mrf.mxu1 }
 0x2c2   : > { %1104 = vst [vmem:[%s2035_s21 + $0x18] sm:$0xff] %v1096_v53  ;;  %v1095_v22 = vadd.f32 %v1087_v58, %v1050_v5  ;;  %v1100_v63 = vadd.f32 %v1092_v2, %v1075_v32  ;;  %v1070_v0 = vadd.f32 %v1069_v21, %v946_v60 }
 0x2c4   : > { %1103 = vst [vmem:[%s2035_s21 + $0x10] sm:$0xff] %v1095_v22  ;;  %1108 = vst [vmem:[%s2035_s21 + $0x38] sm:$0xff] %v1100_v63  ;;  %v1099_v46 = vadd.f32 %v1091_v12, %v1070_v0 }
 0x2c6   : > { %1107 = vst [vmem:[%s2035_s21 + $0x30] sm:$0xff] %v1099_v46 }
 0x2c7   : > { %1510 = shalt.err (!%p1507_p3)
}
 0x2c8   : > { %s1511_s28 = scalar_lea.hbm %s2059_s27, 1024  ;;  %s1515_s23 = scalar_lea.hbm %s2117_s9, 2048 }
 0x2c9   : > { %p1512_p4 = scmp.ne.s32.totalorder %s2059_s27, %s1511_s28  ;;  %p1516_p9 = scmp.lt.s32.totalorder %s2059_s27, %s2117_s9 }
 0x2ca   : > { %p1517_p10 = scmp.lt.s32.totalorder %s1515_s23, %s1511_s28 }
 0x2cb   : > { %p1513_p7 = pnand %p1512_p4, %p1652_p5 }
 0x2cc   : > { %p1518_p11 = por %p1517_p10, %p1516_p9 }
 0x2cd   : > { %p1514_p8 = pneg %p1513_p7 }
 0x2cf   : > { %p1519_p12 = pnand %p1518_p11, %p1514_p8 }
 0x2d1   : > { %1522 = shalt.err (!%p1519_p12)
}
 0x2d2   : > { %s1562_s14 = smov 128   ;;  %s1563_s17 = smov 8  }
 0x2d3   : > { %1420 = dma.vmem_to_hbm [thread:$0]  (%p1652_p5), %s2061_s24, 1024, %s2059_s27, %s2068_s13, %s1562_s14, %s1562_s14, %s1563_s17  }
 0x2d4 PF: > { %p1426_p13 = scmp.ge.s32.totalorder %s1557_s12, 2  ;;  %s1138_s16 = sand.u32 1, %s1545_s30  }
 0x2d5   : > { %s1139_s22 = scalar_lea.sflag [#allocation3], %s1138_s16 }
 0x2d6   : > { %p1423_p0 = pnand %p1426_p13, %p1656_p6 }
 0x2d8   : > { %p1424_p1 = pneg %p1423_p0 }
 0x2da   : > { %1540 = dma.done.wait (%p1424_p1), %s1139_s22, 1024  }
 0x2db   : > { %1542 = vsyncadd (%p1424_p1), %s1139_s22, 4294966272  ;;  %p19_p2 = scmp.ge.s32.totalorder %s1639_s15, 4   ;;  %s2120_s30 = smov %s1549_s10 }
 0x2dc   : > { %s2121_s10 = smov %s1553_s11  ;;  %s2122_s11 = smov %s1650_s18 }
 0x2dd   : > { %s2123_s12 = smov %s1639_s15  ;;  %21 = sbr.rel (!%p19_p2) target bundleno = 3 (0x3), region = 94 }
 0x2e2   :  { %1144 = vsyncpa [#allocation3], 1 }
 0x2e3   :  { %1146 = vsyncpa [#allocation3 + $0x1], 1 }

</bundles_post_ra>
